<compile_context>
chip_gen: v7x
topology: tpu7x:2x2x1
jax: 0.10.0
libtpu: 0.0.40
codegen_flags: <defaults>
</compile_context>

<pallas_src>
import jax
import jax.numpy as jnp
from jax.experimental import pallas as pl
from jax.experimental.pallas import tpu as pltpu

IN_DIM = 7     # len(InputNames)
HID = 64
OUT_DIM = 3    # len(OutputNames)


def _round_up(n, m):
    return ((n + m - 1) // m) * m


def _cdiv(a, b):
    return -(-a // b)


# ---------------------------------------------------------------------------
# Per-generation configuration (packing factor, tile cap, VMEM budget).
# ---------------------------------------------------------------------------
def _device_config():
    try:
        kind = jax.devices()[0].device_kind.lower()
    except Exception:  # pragma: no cover - defensive
        kind = ""
    if "v7" in kind:
        # 2x256x256 MXU, 64 MiB VMEM, 2 TensorCores per chip.
        return dict(pack=4, max_row_tile=2048,
                    vmem_limit_bytes=48 * 1024 * 1024, multi_tc=True)
    if "v6" in kind:
        # 2x256x256 MXU, 128 MiB VMEM, 1 TensorCore.
        return dict(pack=4, max_row_tile=4096,
                    vmem_limit_bytes=80 * 1024 * 1024, multi_tc=False)
    if "v5" in kind and ("lite" in kind or "5e" in kind):
        # 4x128x128 MXU, 128 MiB VMEM, 1 TensorCore.
        return dict(pack=2, max_row_tile=8192,
                    vmem_limit_bytes=80 * 1024 * 1024, multi_tc=False)
    # Unknown / older generations: conservative 128-wide packing, default VMEM.
    return dict(pack=2, max_row_tile=2048,
                vmem_limit_bytes=None, multi_tc=False)


# ---------------------------------------------------------------------------
# Kernel body: 5-layer MLP on a packed [tile, PACK*7] block.
# Weights / biases are VMEM-resident (constant index_map).
# ---------------------------------------------------------------------------
def _mlp_kernel(x_ref,
                w1_ref, b1_ref,
                w2_ref, b2_ref,
                w3_ref, b3_ref,
                w4_ref, b4_ref,
                w5_ref, b5_ref,
                o_ref):
    # x is already bf16; accumulate / bias-add / ReLU in f32.
    h = jnp.dot(x_ref[...], w1_ref[...],
                preferred_element_type=jnp.float32) + b1_ref[...]
    h = jnp.maximum(h, 0.0)

    h = jnp.dot(h.astype(jnp.bfloat16), w2_ref[...],
                preferred_element_type=jnp.float32) + b2_ref[...]
    h = jnp.maximum(h, 0.0)

    h = jnp.dot(h.astype(jnp.bfloat16), w3_ref[...],
                preferred_element_type=jnp.float32) + b3_ref[...]
    h = jnp.maximum(h, 0.0)

    h = jnp.dot(h.astype(jnp.bfloat16), w4_ref[...],
                preferred_element_type=jnp.float32) + b4_ref[...]
    h = jnp.maximum(h, 0.0)

    y = jnp.dot(h.astype(jnp.bfloat16), w5_ref[...],
                preferred_element_type=jnp.float32) + b5_ref[...]
    o_ref[...] = y.astype(o_ref.dtype)


# ---------------------------------------------------------------------------
# Parameter packing (done ONCE, outside the per-call path).
# ---------------------------------------------------------------------------
def _blockdiag(w, pack):
    """diag(W, W, ..., W) — block-diagonal weight for `pack`-way row packing."""
    fi, fo = w.shape
    out = jnp.zeros((pack * fi, pack * fo), w.dtype)
    for p in range(pack):
        out = out.at[p * fi:(p + 1) * fi, p * fo:(p + 1) * fo].set(w)
    return out


def prepare_packed_params(params, config=None):
    """Block-diagonal bf16 weights + tiled f32 biases for the packed kernel."""
    config = config or _device_config()
    pack = config["pack"]
    (w1, b1, w2, b2, w3, b3, w4, b4, w5, b5) = params
    weights = tuple(_blockdiag(w, pack).astype(jnp.bfloat16)
                    for w in (w1, w2, w3, w4, w5))
    biases = tuple(jnp.tile(b.astype(jnp.float32), (1, pack))
                   for b in (b1, b2, b3, b4, b5))
    return dict(config=config, pack=pack, weights=weights, biases=biases)


# ---------------------------------------------------------------------------
# Forward wrapper
# ---------------------------------------------------------------------------
def ils_model_forward(x, packed):
    """x: [B, 7] float32 -> [B, 3] float32 (uses pre-packed params)."""
    cfg = packed["config"]
    pack = packed["pack"]
    wp = packed["weights"]
    bp = packed["biases"]

    B = x.shape[0]
    rows_needed = max(1, _cdiv(B, pack))            # packed rows carrying data

    # Number of grid steps: respect the per-generation tile cap, and on 2-TC
    # chips guarantee >= 2 (even) steps when there is enough work to split.
    n_steps = max(1, _cdiv(rows_needed, cfg["max_row_tile"]))
    if cfg["multi_tc"] and rows_needed >= 16:
        n_steps = max(n_steps, 2)
        if n_steps % 2:
            n_steps += 1

    tile = _round_up(_cdiv(rows_needed, n_steps), 8)   # packed rows per step
    rows_p = tile * n_steps                            # padded packed rows
    Bp = rows_p * pack                                 # padded batch rows

    # bf16 input (matches MXU operand dtype), tail-only padding, free reshape.
    x_bf = x.astype(jnp.bfloat16)
    x_pad = jnp.pad(x_bf, ((0, Bp - B), (0, 0)))
    x_packed = x_pad.reshape(rows_p, pack * IN_DIM)

    def const_spec(a):  # whole array, VMEM-resident across all grid steps
        return pl.BlockSpec(a.shape, lambda i: (0, 0))

    cp_kwargs = dict(dimension_semantics=("parallel",))
    if cfg["vmem_limit_bytes"] is not None:
        cp_kwargs["vmem_limit_bytes"] = cfg["vmem_limit_bytes"]

    out_packed = pl.pallas_call(
        _mlp_kernel,
        out_shape=jax.ShapeDtypeStruct((rows_p, pack * OUT_DIM), jnp.float32),
        grid=(n_steps,),
        in_specs=[
            pl.BlockSpec((tile, pack * IN_DIM), lambda i: (i, 0)),   # x tile
            const_spec(wp[0]), const_spec(bp[0]),
            const_spec(wp[1]), const_spec(bp[1]),
            const_spec(wp[2]), const_spec(bp[2]),
            const_spec(wp[3]), const_spec(bp[3]),
            const_spec(wp[4]), const_spec(bp[4]),
        ],
        out_specs=pl.BlockSpec((tile, pack * OUT_DIM), lambda i: (i, 0)),
        compiler_params=pltpu.CompilerParams(**cp_kwargs),
    )(x_packed,
      wp[0], bp[0], wp[1], bp[1], wp[2], bp[2], wp[3], bp[3], wp[4], bp[4])

    # (rows_p, pack*3) is byte-identical to (Bp, 3); drop the padded rows.
    return out_packed.reshape(Bp, OUT_DIM)[:B]


# ---------------------------------------------------------------------------
# Parameter init (matches nn.init.xavier_uniform_ + PyTorch default bias init)
# ---------------------------------------------------------------------------
def _xavier_uniform(key, fan_in, fan_out):
    a = jnp.sqrt(6.0 / (fan_in + fan_out))
    # Stored as [in, out] (transposed w.r.t. PyTorch's [out, in]).
    return jax.random.uniform(key, (fan_in, fan_out), jnp.float32, -a, a)


def _linear_bias(key, fan_in, fan_out):
    bound = 1.0 / jnp.sqrt(jnp.asarray(fan_in, jnp.float32))
    return jax.random.uniform(key, (1, fan_out), jnp.float32, -bound, bound)


def init_params(key):
    dims = [(IN_DIM, HID), (HID, HID), (HID, HID), (HID, HID), (HID, OUT_DIM)]
    keys = jax.random.split(key, 2 * len(dims))
    params = []
    for i, (fi, fo) in enumerate(dims):
        params.append(_xavier_uniform(keys[2 * i], fi, fo))
        params.append(_linear_bias(keys[2 * i + 1], fi, fo))
    return tuple(params)


def reference_forward(x, params):
    (w1, b1, w2, b2, w3, b3, w4, b4, w5, b5) = params
    h = jnp.maximum(x @ w1 + b1, 0.0)
    h = jnp.maximum(h @ w2 + b2, 0.0)
    h = jnp.maximum(h @ w3 + b3, 0.0)
    h = jnp.maximum(h @ w4 + b4, 0.0)
    return h @ w5 + b5


if __name__ == "__main__":
    key = jax.random.PRNGKey(0)
    k_params, k_x = jax.random.split(key)

    params = init_params(k_params)
    packed = prepare_packed_params(params)        # built once, reused per call

    B = 8  # small batch
    x = jax.random.normal(k_x, (B, IN_DIM), dtype=jnp.float32)

    fwd = jax.jit(lambda xx: ils_model_forward(xx, packed))
    out = jax.block_until_ready(fwd(x))

    ref = reference_forward(x, params)  # full f32 reference
    assert out.shape == (B, OUT_DIM)

    # bf16 MXU operands (f32 accumulation) -> allow a few % relative error.
    scale = jnp.max(jnp.abs(ref)) + 1e-6
    max_err = jnp.max(jnp.abs(out - ref))
    assert max_err <= 3e-2 * scale + 1e-3, (max_err, scale)

    print("KERNEL_OK")
</pallas_src>

<mosaic_0001>
module attributes {stable_mosaic.version = 11 : i64} {
  func.func @_mlp_kernel(%arg0: i32, %arg1: memref<8x14xbf16, #tpu.memory_space<vmem>>, %arg2: memref<14x128xbf16, #tpu.memory_space<vmem>>, %arg3: memref<1x128xf32, #tpu.memory_space<vmem>>, %arg4: memref<128x128xbf16, #tpu.memory_space<vmem>>, %arg5: memref<1x128xf32, #tpu.memory_space<vmem>>, %arg6: memref<128x128xbf16, #tpu.memory_space<vmem>>, %arg7: memref<1x128xf32, #tpu.memory_space<vmem>>, %arg8: memref<128x128xbf16, #tpu.memory_space<vmem>>, %arg9: memref<1x128xf32, #tpu.memory_space<vmem>>, %arg10: memref<128x6xbf16, #tpu.memory_space<vmem>>, %arg11: memref<1x6xf32, #tpu.memory_space<vmem>>, %arg12: memref<8x6xf32, #tpu.memory_space<vmem>>) attributes {dimension_semantics = [#tpu.dimension_semantics<parallel>], iteration_bounds = array<i64: 1>, scalar_prefetch = 0 : i64, scratch_operands = 0 : i64, tpu.core_type = #tpu.core_type<tc>, window_params = [{transform_indices = @transform_0, window_bounds = array<i64: 8, 14>}, {pipeline_mode = #tpu.pipeline_mode<synchronous>, transform_indices = @transform_1, window_bounds = array<i64: 14, 128>}, {pipeline_mode = #tpu.pipeline_mode<synchronous>, transform_indices = @transform_2, window_bounds = array<i64: 1, 128>}, {pipeline_mode = #tpu.pipeline_mode<synchronous>, transform_indices = @transform_3, window_bounds = array<i64: 128, 128>}, {pipeline_mode = #tpu.pipeline_mode<synchronous>, transform_indices = @transform_4, window_bounds = array<i64: 1, 128>}, {pipeline_mode = #tpu.pipeline_mode<synchronous>, transform_indices = @transform_5, window_bounds = array<i64: 128, 128>}, {pipeline_mode = #tpu.pipeline_mode<synchronous>, transform_indices = @transform_6, window_bounds = array<i64: 1, 128>}, {pipeline_mode = #tpu.pipeline_mode<synchronous>, transform_indices = @transform_7, window_bounds = array<i64: 128, 128>}, {pipeline_mode = #tpu.pipeline_mode<synchronous>, transform_indices = @transform_8, window_bounds = array<i64: 1, 128>}, {pipeline_mode = #tpu.pipeline_mode<synchronous>, transform_indices = @transform_9, window_bounds = array<i64: 128, 6>}, {pipeline_mode = #tpu.pipeline_mode<synchronous>, transform_indices = @transform_10, window_bounds = array<i64: 1, 6>}, {transform_indices = @transform_11, window_bounds = array<i64: 8, 6>}]} {
    %c0 = arith.constant 0 : index
    %c0_0 = arith.constant 0 : index
    %0 = vector.load %arg1[%c0, %c0_0] : memref<8x14xbf16, #tpu.memory_space<vmem>>, vector<8x14xbf16>
    %c0_1 = arith.constant 0 : index
    %c0_2 = arith.constant 0 : index
    %1 = vector.load %arg2[%c0_1, %c0_2] : memref<14x128xbf16, #tpu.memory_space<vmem>>, vector<14x128xbf16>
    %cst = arith.constant dense<0.000000e+00> : vector<8x128xf32>
    %2 = tpu.matmul %0, %1, %cst {dimension_numbers = #tpu.dot_dimension_numbers<[1], [0], [0], [1], [0, 0, 1, 1], [], []>} : vector<8x14xbf16>, vector<14x128xbf16>, vector<8x128xf32> -> vector<8x128xf32>
    %c0_3 = arith.constant 0 : index
    %c0_4 = arith.constant 0 : index
    %3 = vector.load %arg3[%c0_3, %c0_4] : memref<1x128xf32, #tpu.memory_space<vmem>>, vector<1x128xf32>
    %4 = vector.broadcast %3 : vector<1x128xf32> to vector<8x128xf32>
    %5 = arith.addf %2, %4 : vector<8x128xf32>
    %cst_5 = arith.constant 0.000000e+00 : f32
    %6 = vector.broadcast %cst_5 : f32 to vector<8x128xf32>
    %7 = arith.maximumf %5, %6 : vector<8x128xf32>
    %8 = arith.truncf %7 : vector<8x128xf32> to vector<8x128xbf16>
    %c0_6 = arith.constant 0 : index
    %c0_7 = arith.constant 0 : index
    %9 = vector.load %arg4[%c0_6, %c0_7] : memref<128x128xbf16, #tpu.memory_space<vmem>>, vector<128x128xbf16>
    %cst_8 = arith.constant dense<0.000000e+00> : vector<8x128xf32>
    %10 = tpu.matmul %8, %9, %cst_8 {dimension_numbers = #tpu.dot_dimension_numbers<[1], [0], [0], [1], [0, 0, 1, 1], [], []>} : vector<8x128xbf16>, vector<128x128xbf16>, vector<8x128xf32> -> vector<8x128xf32>
    %c0_9 = arith.constant 0 : index
    %c0_10 = arith.constant 0 : index
    %11 = vector.load %arg5[%c0_9, %c0_10] : memref<1x128xf32, #tpu.memory_space<vmem>>, vector<1x128xf32>
    %12 = vector.broadcast %11 : vector<1x128xf32> to vector<8x128xf32>
    %13 = arith.addf %10, %12 : vector<8x128xf32>
    %cst_11 = arith.constant 0.000000e+00 : f32
    %14 = vector.broadcast %cst_11 : f32 to vector<8x128xf32>
    %15 = arith.maximumf %13, %14 : vector<8x128xf32>
    %16 = arith.truncf %15 : vector<8x128xf32> to vector<8x128xbf16>
    %c0_12 = arith.constant 0 : index
    %c0_13 = arith.constant 0 : index
    %17 = vector.load %arg6[%c0_12, %c0_13] : memref<128x128xbf16, #tpu.memory_space<vmem>>, vector<128x128xbf16>
    %cst_14 = arith.constant dense<0.000000e+00> : vector<8x128xf32>
    %18 = tpu.matmul %16, %17, %cst_14 {dimension_numbers = #tpu.dot_dimension_numbers<[1], [0], [0], [1], [0, 0, 1, 1], [], []>} : vector<8x128xbf16>, vector<128x128xbf16>, vector<8x128xf32> -> vector<8x128xf32>
    %c0_15 = arith.constant 0 : index
    %c0_16 = arith.constant 0 : index
    %19 = vector.load %arg7[%c0_15, %c0_16] : memref<1x128xf32, #tpu.memory_space<vmem>>, vector<1x128xf32>
    %20 = vector.broadcast %19 : vector<1x128xf32> to vector<8x128xf32>
    %21 = arith.addf %18, %20 : vector<8x128xf32>
    %cst_17 = arith.constant 0.000000e+00 : f32
    %22 = vector.broadcast %cst_17 : f32 to vector<8x128xf32>
    %23 = arith.maximumf %21, %22 : vector<8x128xf32>
    %24 = arith.truncf %23 : vector<8x128xf32> to vector<8x128xbf16>
    %c0_18 = arith.constant 0 : index
    %c0_19 = arith.constant 0 : index
    %25 = vector.load %arg8[%c0_18, %c0_19] : memref<128x128xbf16, #tpu.memory_space<vmem>>, vector<128x128xbf16>
    %cst_20 = arith.constant dense<0.000000e+00> : vector<8x128xf32>
    %26 = tpu.matmul %24, %25, %cst_20 {dimension_numbers = #tpu.dot_dimension_numbers<[1], [0], [0], [1], [0, 0, 1, 1], [], []>} : vector<8x128xbf16>, vector<128x128xbf16>, vector<8x128xf32> -> vector<8x128xf32>
    %c0_21 = arith.constant 0 : index
    %c0_22 = arith.constant 0 : index
    %27 = vector.load %arg9[%c0_21, %c0_22] : memref<1x128xf32, #tpu.memory_space<vmem>>, vector<1x128xf32>
    %28 = vector.broadcast %27 : vector<1x128xf32> to vector<8x128xf32>
    %29 = arith.addf %26, %28 : vector<8x128xf32>
    %cst_23 = arith.constant 0.000000e+00 : f32
    %30 = vector.broadcast %cst_23 : f32 to vector<8x128xf32>
    %31 = arith.maximumf %29, %30 : vector<8x128xf32>
    %32 = arith.truncf %31 : vector<8x128xf32> to vector<8x128xbf16>
    %c0_24 = arith.constant 0 : index
    %c0_25 = arith.constant 0 : index
    %33 = vector.load %arg10[%c0_24, %c0_25] : memref<128x6xbf16, #tpu.memory_space<vmem>>, vector<128x6xbf16>
    %cst_26 = arith.constant dense<0.000000e+00> : vector<8x6xf32>
    %34 = tpu.matmul %32, %33, %cst_26 {dimension_numbers = #tpu.dot_dimension_numbers<[1], [0], [0], [1], [0, 0, 1, 1], [], []>} : vector<8x128xbf16>, vector<128x6xbf16>, vector<8x6xf32> -> vector<8x6xf32>
    %c0_27 = arith.constant 0 : index
    %c0_28 = arith.constant 0 : index
    %35 = vector.load %arg11[%c0_27, %c0_28] : memref<1x6xf32, #tpu.memory_space<vmem>>, vector<1x6xf32>
    %36 = vector.broadcast %35 : vector<1x6xf32> to vector<8x6xf32>
    %37 = arith.addf %34, %36 : vector<8x6xf32>
    %c0_29 = arith.constant 0 : index
    %c0_30 = arith.constant 0 : index
    %38 = vector.load %arg12[%c0_29, %c0_30] : memref<8x6xf32, #tpu.memory_space<vmem>>, vector<8x6xf32>
    tpu.vector_store %arg12[%c0_29, %c0_30], %37 {strides = array<i32>} : memref<8x6xf32, #tpu.memory_space<vmem>>, vector<8x6xf32>,
    return
  }
  func.func @transform_0(%arg0: i32) -> (i32, i32) {
    %c0_i32 = arith.constant 0 : i32
    %c0_i32_0 = arith.constant 0 : i32
    return %arg0, %c0_i32 : i32, i32
  }
  func.func @transform_1(%arg0: i32) -> (i32, i32) {
    %c0_i32 = arith.constant 0 : i32
    %c0_i32_0 = arith.constant 0 : i32
    %c0_i32_1 = arith.constant 0 : i32
    return %c0_i32, %c0_i32_0 : i32, i32
  }
  func.func @transform_2(%arg0: i32) -> (i32, i32) {
    %c0_i32 = arith.constant 0 : i32
    %c0_i32_0 = arith.constant 0 : i32
    %c0_i32_1 = arith.constant 0 : i32
    return %c0_i32, %c0_i32_0 : i32, i32
  }
  func.func @transform_3(%arg0: i32) -> (i32, i32) {
    %c0_i32 = arith.constant 0 : i32
    %c0_i32_0 = arith.constant 0 : i32
    %c0_i32_1 = arith.constant 0 : i32
    return %c0_i32, %c0_i32_0 : i32, i32
  }
  func.func @transform_4(%arg0: i32) -> (i32, i32) {
    %c0_i32 = arith.constant 0 : i32
    %c0_i32_0 = arith.constant 0 : i32
    %c0_i32_1 = arith.constant 0 : i32
    return %c0_i32, %c0_i32_0 : i32, i32
  }
  func.func @transform_5(%arg0: i32) -> (i32, i32) {
    %c0_i32 = arith.constant 0 : i32
    %c0_i32_0 = arith.constant 0 : i32
    %c0_i32_1 = arith.constant 0 : i32
    return %c0_i32, %c0_i32_0 : i32, i32
  }
  func.func @transform_6(%arg0: i32) -> (i32, i32) {
    %c0_i32 = arith.constant 0 : i32
    %c0_i32_0 = arith.constant 0 : i32
    %c0_i32_1 = arith.constant 0 : i32
    return %c0_i32, %c0_i32_0 : i32, i32
  }
  func.func @transform_7(%arg0: i32) -> (i32, i32) {
    %c0_i32 = arith.constant 0 : i32
    %c0_i32_0 = arith.constant 0 : i32
    %c0_i32_1 = arith.constant 0 : i32
    return %c0_i32, %c0_i32_0 : i32, i32
  }
  func.func @transform_8(%arg0: i32) -> (i32, i32) {
    %c0_i32 = arith.constant 0 : i32
    %c0_i32_0 = arith.constant 0 : i32
    %c0_i32_1 = arith.constant 0 : i32
    return %c0_i32, %c0_i32_0 : i32, i32
  }
  func.func @transform_9(%arg0: i32) -> (i32, i32) {
    %c0_i32 = arith.constant 0 : i32
    %c0_i32_0 = arith.constant 0 : i32
    %c0_i32_1 = arith.constant 0 : i32
    return %c0_i32, %c0_i32_0 : i32, i32
  }
  func.func @transform_10(%arg0: i32) -> (i32, i32) {
    %c0_i32 = arith.constant 0 : i32
    %c0_i32_0 = arith.constant 0 : i32
    %c0_i32_1 = arith.constant 0 : i32
    return %c0_i32, %c0_i32_0 : i32, i32
  }
  func.func @transform_11(%arg0: i32) -> (i32, i32) {
    %c0_i32 = arith.constant 0 : i32
    %c0_i32_0 = arith.constant 0 : i32
    return %arg0, %c0_i32 : i32, i32
  }
}

</mosaic_0001>

<bundles_post_ra>
// kernel: _lambda_.1
= control target key start
LH: loop header
LB: loop body
LE: loop exit
PB: predicated region body
PF: predicated region fallthrough
CT: control target
= control target key end

     0   :  { %16 = vsyncpa [#allocation3], 0  ;;  %s1086_s0 = inlined_call_operand.vmem [shape: bf16[8,14], index: 0, kind: input, shape index: {}]   ;;  %s1087_s1 = inlined_call_operand.vmem [shape: bf16[14,128], index: 1, kind: input, shape index: {}]   ;;  %s1088_s2 = inlined_call_operand.vmem [shape: f32[1,128], index: 2, kind: input, shape index: {}]   ;;  %s1089_s3 = inlined_call_operand.hbm [shape: bf16[128,128], index: 3, kind: input, shape index: {}]   ;;  %s1090_s4 = inlined_call_operand.vmem [shape: f32[1,128], index: 4, kind: input, shape index: {}]   ;;  %s1091_s5 = inlined_call_operand.hbm [shape: bf16[128,128], index: 5, kind: input, shape index: {}]   ;;  %s1092_s6 = inlined_call_operand.vmem [shape: f32[1,128], index: 6, kind: input, shape index: {}]   ;;  %s1093_s7 = inlined_call_operand.hbm [shape: bf16[128,128], index: 7, kind: input, shape index: {}]   ;;  %s1094_s8 = inlined_call_operand.vmem [shape: f32[1,128], index: 8, kind: input, shape index: {}]   ;;  %s1095_s9 = inlined_call_operand.vmem [shape: bf16[128,6], index: 9, kind: input, shape index: {}]   ;;  %s1096_s10 = inlined_call_operand.vmem [shape: f32[1,6], index: 10, kind: input, shape index: {}]   ;;  %s1097_s11 = inlined_call_operand.vmem [shape: f32[8,6], index: 11, kind: output, shape index: {}]  }
   0x1   :  { %17 = vsyncpa [#allocation5], 0  ;;  %s876_s17 = smov [#allocation4]   ;;  %s877_s19 = smov [#allocation2]  }
   0x2   :  { %s43_s18 = sshll.u32 %s876_s17, 4  ;;  %s29_s20 = sshll.u32 %s877_s19, 4  ;;  %s44_s18 = int_to_ptr.vmem [resolvable:$true] %s43_s18  ;;  %s943_s20 = int_to_ptr.vmem [resolvable:$true] %s29_s20 }
   0x3   :  { %s806_s23 = scalar_lea.hbm %s1091_s5, 1024 }
   0x4   :  { %p807_p0 = scmp.ne.s32.totalorder %s1091_s5, %s806_s23  ;;  %p810_p1 = scmp.lt.u32.totalorder %s806_s23, %s1091_s5 }
   0x6   :  { %p812_p2 = pnand %p810_p1, %p807_p0 }
   0x8   :  { %815 = shalt.err (!%p812_p2)
}
   0x9   :  { %s816_s28 = scalar_lea.vmem %s44_s18, 1024  ;;  %p821_p4 = scmp.lt.s32.totalorder %s44_s18, %s44_s18 }
   0xa   :  { %p817_p3 = scmp.ne.s32.totalorder %s44_s18, %s816_s28  ;;  %p822_p5 = scmp.lt.s32.totalorder %s816_s28, %s816_s28 }
   0xc   :  { %p823_p6 = por %p822_p5, %p821_p4 }
   0xe   :  { %p824_p7 = pnand %p823_p6, %p817_p3 }
  0x10   :  { %827 = shalt.err (!%p824_p7)
}
  0x11   :  { %s878_s29 = smov 64   ;;  %s879_s30 = smov 4  }
  0x12   :  { %49 = dma.hbm_to_vmem [thread:$0]  %s1091_s5, 1024, %s44_s18, [#allocation5], %s878_s29, %s878_s29, %s879_s30  }
  0x13   :  { %s828_s16 = scalar_lea.hbm %s1089_s3, 1024 }
  0x14   :  { %p829_p8 = scmp.ne.s32.totalorder %s1089_s3, %s828_s16  ;;  %p832_p9 = scmp.lt.u32.totalorder %s828_s16, %s1089_s3 }
  0x16   :  { %p834_p10 = pnand %p832_p9, %p829_p8 }
  0x18   :  { %837 = shalt.err (!%p834_p10)
}
  0x19   :  { %s838_s23 = scalar_lea.vmem %s943_s20, 1024  ;;  %p843_p12 = scmp.lt.s32.totalorder %s943_s20, %s943_s20 }
  0x1a   :  { %p839_p11 = scmp.ne.s32.totalorder %s943_s20, %s838_s23  ;;  %p844_p13 = scmp.lt.s32.totalorder %s838_s23, %s838_s23 }
  0x1c   :  { %p845_p0 = por %p844_p13, %p843_p12 }
  0x1e   :  { %p846_p1 = pnand %p845_p0, %p839_p11 }
  0x20   :  { %849 = shalt.err (!%p846_p1)
}
  0x21   :  { %35 = dma.hbm_to_vmem [thread:$0]  %s1089_s3, 1024, %s943_s20, [#allocation3], %s878_s29, %s878_s29, %s879_s30  }
  0x22   :  { %s880_s24 = smov [#allocation6]   ;;  %s850_s28 = scalar_lea.hbm %s1093_s7, 1024 }
  0x23   :  { %s57_s25 = sshll.u32 %s880_s24, 4  ;;  %p851_p2 = scmp.ne.s32.totalorder %s1093_s7, %s850_s28  ;;  %s58_s25 = int_to_ptr.vmem [resolvable:$true] %s57_s25 }
  0x24   :  { %p854_p3 = scmp.lt.u32.totalorder %s850_s28, %s1093_s7 }
  0x26   :  { %p856_p4 = pnand %p854_p3, %p851_p2 }
  0x28   :  { %859 = shalt.err (!%p856_p4)
}
  0x29   :  { %s860_s16 = scalar_lea.vmem %s58_s25, 1024  ;;  %p865_p6 = scmp.lt.s32.totalorder %s58_s25, %s58_s25 }
  0x2a   :  { %p861_p5 = scmp.ne.s32.totalorder %s58_s25, %s860_s16  ;;  %p866_p7 = scmp.lt.s32.totalorder %s860_s16, %s860_s16 }
  0x2c   :  { %p867_p8 = por %p866_p7, %p865_p6 }
  0x2e   :  { %p868_p9 = pnand %p867_p8, %p861_p5 }
  0x30   :  { %871 = shalt.err (!%p868_p9)
}
  0x31   :  { %63 = dma.hbm_to_vmem [thread:$0]  %s1093_s7, 1024, %s58_s25, [#allocation5], %s878_s29, %s878_s29, %s879_s30  }
  0x32   :  { %872 = dma.done.wait [#allocation3], 1024  }
  0x33   :  { %873 = vsyncadd [#allocation3], 4294966272 }
  0x34   :  { %874 = dma.done.wait [#allocation5], 2048  }
  0x35   :  { %875 = vsyncadd [#allocation5], 4294965248  ;;  %v881_v0 = vmov 0.0   ;;  %vm882_vm0 = vmmov 0   ;;  %vm99_vm1 = vcmask 1046528   ;;  %vm95_vm2 = vcmask 113664  }
  0x36   :  { %680 = vmatprep.subr.bf16.mxu0 %v881_v0  ;;  %682 = vmatprep.mubr.msk.bf16.mxu0 %vm882_vm0, %v881_v0  ;;  %v773_v1 = vld [vmem:[%s1087_s1] sm:$0x7f]   ;;  %v775_v5 = vld [vmem:[#allocation2 + $0x8] sm:$0xff]   ;;  %v776_v6 = vld [vmem:[#allocation2 + $0x10] sm:$0xff]   ;;  %vm595_vm3 = vcmask 48128  }
  0x37   :  { %686 = vmatprep.subr.bf16.mxu1 %v881_v0  ;;  %702 = vmatprep.mubr.msk.bf16.mxu1 %vm882_vm0, %v881_v0  ;;  %v101_v2 = vsel %vm99_vm1, %v773_v1, 0  ;;  %v774_v3 = vld [vmem:[#allocation2] sm:$0xff]   ;;  %v777_v7 = vld [vmem:[#allocation2 + $0x18] sm:$0xff]   ;;  %v779_v9 = vld [vmem:[#allocation2 + $0x28] sm:$0xff]  }
  0x38   :  { %681 = vmatpush3.bf16.msra.mxu0 %v101_v2  ;;  %v80_v4 = vld [vmem:[%s1086_s0] sm:$0xf]  ;;  %687 = vmatpush3.bf16.msra.mxu1 %v774_v3  ;;  %v780_v10 = vld [vmem:[#allocation2 + $0x30] sm:$0xff]   ;;  %v781_v11 = vld [vmem:[#allocation2 + $0x38] sm:$0xff]  }
  0x39   :  { %706 = vmatprep.subr.bf16.mxu0 %v881_v0  ;;  %688 = vmatprep.subr.bf16.mxu1 %v881_v0  ;;  %v778_v8 = vld [vmem:[#allocation2 + $0x20] sm:$0xff]   ;;  %v783_v13 = vld [vmem:[#allocation4 + $0x8] sm:$0xff]   ;;  %v784_v14 = vld [vmem:[#allocation4 + $0x10] sm:$0xff]  }
  0x3a   :  { %v782_v12 = vld [vmem:[#allocation4] sm:$0xff]   ;;  %v785_v15 = vld [vmem:[#allocation4 + $0x18] sm:$0xff]   ;;  %v787_v17 = vld [vmem:[#allocation4 + $0x28] sm:$0xff]  }
  0x3b   :  { %683 = vmatmul.mubr.msk.bf16.vlgmr.msra.gmra.mrb[0].mxu0 %vm95_vm2, %v80_v4  ;;  %v786_v16 = vld [vmem:[#allocation4 + $0x20] sm:$0xff]   ;;  %v788_v26 = vld [vmem:[#allocation4 + $0x30] sm:$0xff]   ;;  %v789_v27 = vld [vmem:[#allocation4 + $0x38] sm:$0xff]  }
  0x3c   :  { %722 = vmatprep.mubr.msk.bf16.mxu0 %vm882_vm0, %v881_v0  ;;  %689 = vmatpush3.bf16.msra.mxu1 %v775_v5  ;;  %v603_v18 = vld [vmem:[%s1088_s2] ss:$0 sm:$0xff]  ;;  %v791_v29 = vld [vmem:[#allocation6 + $0x8] sm:$0xff]   ;;  %v792_v30 = vld [vmem:[#allocation6 + $0x10] sm:$0xff]  }
  0x3d   :  { %690 = vmatprep.subr.bf16.mxu1 %v881_v0  ;;  %707 = vmatpush3.bf16.msra.mxu0 %v782_v12  ;;  %v790_v28 = vld [vmem:[#allocation6] sm:$0xff]   ;;  %v793_v31 = vld [vmem:[#allocation6 + $0x18] sm:$0xff]   ;;  %v795_v33 = vld [vmem:[#allocation6 + $0x28] sm:$0xff]  }
  0x3e   :  { %708 = vmatprep.subr.bf16.mxu0 %v881_v0  ;;  %v794_v32 = vld [vmem:[#allocation6 + $0x20] sm:$0xff]   ;;  %v796_v42 = vld [vmem:[#allocation6 + $0x30] sm:$0xff]   ;;  %v797_v43 = vld [vmem:[#allocation6 + $0x38] sm:$0xff]  }
  0x3f   :  { %v606_v34 = vld [vmem:[%s1090_s4] ss:$0 sm:$0xff]  ;;  %v799_v45 = vld [vmem:[%s1095_s9 + $0x8] sm:$0xff]   ;;  %v800_v46 = vld [vmem:[%s1095_s9 + $0x10] sm:$0xff]  }
  0x40   :  { %691 = vmatpush3.bf16.msra.mxu1 %v776_v6  ;;  %v798_v44 = vld [vmem:[%s1095_s9] sm:$0xff]   ;;  %v801_v47 = vld [vmem:[%s1095_s9 + $0x18] sm:$0xff]   ;;  %v803_v49 = vld [vmem:[%s1095_s9 + $0x28] sm:$0xff]  }
  0x41   :  { %692 = vmatprep.subr.bf16.mxu1 %v881_v0  ;;  %709 = vmatpush3.bf16.msra.mxu0 %v783_v13  ;;  %v802_v48 = vld [vmem:[%s1095_s9 + $0x20] sm:$0xff]   ;;  %v804_v58 = vld [vmem:[%s1095_s9 + $0x30] sm:$0xff]   ;;  %v805_v59 = vld [vmem:[%s1095_s9 + $0x38] sm:$0xff]  }
  0x42   :  { %710 = vmatprep.subr.bf16.mxu0 %v881_v0  ;;  %v615_v50 = vld [vmem:[%s1092_s6] ss:$0 sm:$0xff] }
  0x43   :  { %v624_v60 = vld [vmem:[%s1094_s8] ss:$0 sm:$0xff] }
  0x44   :  { %693 = vmatpush3.bf16.msra.mxu1 %v777_v7 }
  0x45   :  { %694 = vmatprep.subr.bf16.mxu1 %v881_v0  ;;  %711 = vmatpush3.bf16.msra.mxu0 %v784_v14 }
  0x46   :  { %712 = vmatprep.subr.bf16.mxu0 %v881_v0 }
  0x48   :  { %695 = vmatpush3.bf16.msra.mxu1 %v778_v8 }
  0x49   :  { %696 = vmatprep.subr.bf16.mxu1 %v881_v0  ;;  %713 = vmatpush3.bf16.msra.mxu0 %v785_v15 }
  0x4a   :  { %714 = vmatprep.subr.bf16.mxu0 %v881_v0 }
  0x4c   :  { %697 = vmatpush3.bf16.msra.mxu1 %v779_v9 }
  0x4d   :  { %698 = vmatprep.subr.bf16.mxu1 %v881_v0  ;;  %715 = vmatpush3.bf16.msra.mxu0 %v786_v16 }
  0x4e   :  { %716 = vmatprep.subr.bf16.mxu0 %v881_v0 }
  0x50   :  { %699 = vmatpush3.bf16.msra.mxu1 %v780_v10 }
  0x51   :  { %700 = vmatprep.subr.bf16.mxu1 %v881_v0  ;;  %717 = vmatpush3.bf16.msra.mxu0 %v787_v17 }
  0x52   :  { %718 = vmatprep.subr.bf16.mxu0 %v881_v0 }
  0x54   :  { %701 = vmatpush3.bf16.msra.mxu1 %v781_v11 }
  0x55   :  { %726 = vmatprep.subr.bf16.mxu1 %v881_v0  ;;  %719 = vmatpush3.bf16.msra.mxu0 %v788_v26 }
  0x56   :  { %720 = vmatprep.subr.bf16.mxu0 %v881_v0 }
  0x59   :  { %721 = vmatpush3.bf16.msra.mxu0 %v789_v27 }
  0x5a   :  { %746 = vmatprep.subr.bf16.mxu0 %v881_v0 }
 0x10e   :  { %v137_v19 = vpop.f32.mrb[0].mxu0 }
 0x10f   :  { %v138_v20 = vadd.f32 %v603_v18, %v137_v19  ;;  %v684_v21 = vpop.f32.mrb[1].mxu0 }
 0x110   :  { %v140_v22 = vpop.f32.mrb[2].mxu0 }
 0x111   :  { %v143_v23 = vmax.f32 %v138_v20, 0.0  ;;  %v685_v24 = vpop.f32.mrb[3].mxu0 }
 0x113   :  { %v144_v25 = vpack.c.bf16 %v143_v23, %v143_v23 }
 0x115   :  { %703 = vmatmul.mubr.bf16.vlgmr.msra.gmra.mrb[0].mxu1 %v144_v25 }
 0x116   :  { %742 = vmatprep.mubr.msk.bf16.mxu1 %vm882_vm0, %v881_v0  ;;  %727 = vmatpush3.bf16.msra.mxu1 %v790_v28 }
 0x117   :  { %728 = vmatprep.subr.bf16.mxu1 %v881_v0 }
 0x11a   :  { %729 = vmatpush3.bf16.msra.mxu1 %v791_v29 }
 0x11b   :  { %730 = vmatprep.subr.bf16.mxu1 %v881_v0 }
 0x11e   :  { %731 = vmatpush3.bf16.msra.mxu1 %v792_v30 }
 0x11f   :  { %732 = vmatprep.subr.bf16.mxu1 %v881_v0 }
 0x122   :  { %733 = vmatpush3.bf16.msra.mxu1 %v793_v31 }
 0x123   :  { %734 = vmatprep.subr.bf16.mxu1 %v881_v0 }
 0x126   :  { %735 = vmatpush3.bf16.msra.mxu1 %v794_v32 }
 0x127   :  { %736 = vmatprep.subr.bf16.mxu1 %v881_v0 }
 0x12a   :  { %737 = vmatpush3.bf16.msra.mxu1 %v795_v33 }
 0x12b   :  { %738 = vmatprep.subr.bf16.mxu1 %v881_v0 }
 0x12e   :  { %739 = vmatpush3.bf16.msra.mxu1 %v796_v42 }
 0x12f   :  { %740 = vmatprep.subr.bf16.mxu1 %v881_v0 }
 0x132   :  { %741 = vmatpush3.bf16.msra.mxu1 %v797_v43 }
 0x1e8   :  { %v250_v35 = vpop.f32.mrb[0].mxu1 }
 0x1e9   :  { %v251_v36 = vadd.f32 %v606_v34, %v250_v35  ;;  %v704_v37 = vpop.f32.mrb[1].mxu1 }
 0x1ea   :  { %v253_v38 = vpop.f32.mrb[2].mxu1 }
 0x1eb   :  { %v256_v39 = vmax.f32 %v251_v36, 0.0  ;;  %v705_v40 = vpop.f32.mrb[3].mxu1 }
 0x1ed   :  { %v257_v41 = vpack.c.bf16 %v256_v39, %v256_v39 }
 0x1ef   :  { %723 = vmatmul.mubr.bf16.vlgmr.msra.gmra.mrb[4].mxu0 %v257_v41 }
 0x1f0   :  { %762 = vmatprep.mubr.msk.bf16.mxu0 %vm882_vm0, %v881_v0  ;;  %747 = vmatpush3.bf16.msra.mxu0 %v798_v44 }
 0x1f1   :  { %748 = vmatprep.subr.bf16.mxu0 %v881_v0 }
 0x1f4   :  { %749 = vmatpush3.bf16.msra.mxu0 %v799_v45 }
 0x1f5   :  { %750 = vmatprep.subr.bf16.mxu0 %v881_v0 }
 0x1f8   :  { %751 = vmatpush3.bf16.msra.mxu0 %v800_v46 }
 0x1f9   :  { %752 = vmatprep.subr.bf16.mxu0 %v881_v0 }
 0x1fc   :  { %753 = vmatpush3.bf16.msra.mxu0 %v801_v47 }
 0x1fd   :  { %754 = vmatprep.subr.bf16.mxu0 %v881_v0 }
 0x200   :  { %755 = vmatpush3.bf16.msra.mxu0 %v802_v48 }
 0x201   :  { %756 = vmatprep.subr.bf16.mxu0 %v881_v0 }
 0x204   :  { %757 = vmatpush3.bf16.msra.mxu0 %v803_v49 }
 0x205   :  { %758 = vmatprep.subr.bf16.mxu0 %v881_v0 }
 0x208   :  { %759 = vmatpush3.bf16.msra.mxu0 %v804_v58 }
 0x209   :  { %760 = vmatprep.subr.bf16.mxu0 %v881_v0  ;;  %v633_v0 = vld [vmem:[%s1096_s10] ss:$0 sm:$0xff] }
 0x20c   :  { %761 = vmatpush3.bf16.msra.mxu0 %v805_v59 }
 0x2c2   :  { %v363_v51 = vpop.f32.mrb[4].mxu0 }
 0x2c3   :  { %v364_v52 = vadd.f32 %v615_v50, %v363_v51  ;;  %v724_v53 = vpop.f32.mrb[5].mxu0 }
 0x2c4   :  { %v366_v54 = vpop.f32.mrb[6].mxu0 }
 0x2c5   :  { %v369_v55 = vmax.f32 %v364_v52, 0.0  ;;  %v725_v56 = vpop.f32.mrb[7].mxu0 }
 0x2c7   :  { %v370_v57 = vpack.c.bf16 %v369_v55, %v369_v55 }
 0x2c9   :  { %743 = vmatmul.mubr.bf16.vlgmr.msra.gmra.mrb[4].mxu1 %v370_v57 }
 0x39c   :  { %v476_v61 = vpop.f32.mrb[4].mxu1 }
 0x39d   :  { %v477_v62 = vadd.f32 %v624_v60, %v476_v61  ;;  %v744_v63 = vpop.f32.mrb[5].mxu1 }
 0x39e   :  { %v479_v1 = vpop.f32.mrb[6].mxu1 }
 0x39f   :  { %v482_v2 = vmax.f32 %v477_v62, 0.0  ;;  %v745_v3 = vpop.f32.mrb[7].mxu1 }
 0x3a1   :  { %v483_v4 = vpack.c.bf16 %v482_v2, %v482_v2 }
 0x3a3   :  { %763 = vmatmul.mubr.bf16.vlgmr.msra.gmra.mrb[8].mxu0 %v483_v4 }
 0x476   :  { %v589_v5 = vpop.f32.mrb[8].mxu0 }
 0x477   :  { %v590_v6 = vadd.f32 %v633_v0, %v589_v5  ;;  %v764_v7 = vpop.f32.mrb[9].mxu0 }
 0x478   :  { %v592_v8 = vpop.f32.mrb[10].mxu0 }
 0x479   :  { %596 = vst.msk [vmem:[%s1097_s11] sm:$0xff] %vm595_vm3, %v590_v6  ;;  %v765_v9 = vpop.f32.mrb[11].mxu0 }
 0x47a   :  { %601 = vsyncpa [#allocation3], 1 }
 0x47b   :  { %602 = vsyncpa [#allocation5], 1 }

</bundles_post_ra>
